<compile_context>
chip_gen: v5e
topology: v5e:2x2
jax: 0.10.0
libtpu: 0.0.40
codegen_flags: <defaults>
</compile_context>

<pallas_src>
import math

import jax
import jax.numpy as jnp
from jax.experimental import pallas as pl
from jax.experimental.pallas import tpu as pltpu


IN_FEATURES = 5
OUT_FEATURES = 10
MIN_VALUE = 0.0
MAX_VALUE = 1.0
TM_CAP = 2048  # rows per grid step (multiple of 8); VMEM-safe on v5e/v6e/v7x


def _round_up(x, n):
    return (x + n - 1) // n * n


def _linear_clamp_kernel(x_ref, w_ref, b_ref, o_ref):
    # x_ref: (TM, 5), w_ref: (5, 10), b_ref: (1, 10), o_ref: (TM, 10)
    y = jnp.dot(x_ref[...], w_ref[...], preferred_element_type=jnp.float32)
    o_ref[...] = jnp.clip(y + b_ref[...], MIN_VALUE, MAX_VALUE)


def prepare_params(weight, bias):
    """Hoisted param prep (call once): weight (OUT, IN) -> (IN, OUT); bias -> (1, OUT)."""
    w_t = jnp.asarray(weight, jnp.float32).T
    b2d = jnp.asarray(bias, jnp.float32).reshape(1, OUT_FEATURES)
    return w_t, b2d


@jax.jit
def linear_clamp(x, w_t, b2d):
    """x: (..., 5) f32, w_t: (5, 10), b2d: (1, 10)
    -> (..., 10) f32 = clamp(x @ W^T + b, MIN_VALUE, MAX_VALUE)."""
    lead_shape = x.shape[:-1]
    m = math.prod(lead_shape) if lead_shape else 1
    if m == 0:  # static (shape-derived) branch
        return jnp.zeros((*lead_shape, OUT_FEATURES), jnp.float32)

    x2d = x.reshape(m, IN_FEATURES).astype(jnp.float32)

    # Row tile: multiple of 8 sublanes, ~half the rows so the parallel axis has
    # >= 2 programs (dual-TC on v7x), capped at TM_CAP for VMEM / pipelining.
    tm = min(TM_CAP, _round_up(max(-(-m // 2), 1), 8))
    m_pad = _round_up(m, tm)
    if m_pad != m:
        x2d = jnp.pad(x2d, ((0, m_pad - m), (0, 0)))

    out = pl.pallas_call(
        _linear_clamp_kernel,
        out_shape=jax.ShapeDtypeStruct((m_pad, OUT_FEATURES), jnp.float32),
        grid=(m_pad // tm,),
        in_specs=[
            pl.BlockSpec((tm, IN_FEATURES), lambda i: (i, 0)),
            pl.BlockSpec((IN_FEATURES, OUT_FEATURES), lambda i: (0, 0)),
            pl.BlockSpec((1, OUT_FEATURES), lambda i: (0, 0)),
        ],
        out_specs=pl.BlockSpec((tm, OUT_FEATURES), lambda i: (i, 0)),
        compiler_params=pltpu.CompilerParams(
            dimension_semantics=("parallel",)),
    )(x2d, w_t, b2d)

    return out[:m].reshape(*lead_shape, OUT_FEATURES)


if __name__ == "__main__":
    key = jax.random.PRNGKey(0)
    kx, kw, kb = jax.random.split(key, 3)

    # Deterministic "parameters" for Linear(5, 10) (PyTorch-style fan-in init range).
    bound = 1.0 / (IN_FEATURES ** 0.5)
    weight = jax.random.uniform(
        kw, (OUT_FEATURES, IN_FEATURES), jnp.float32, -bound, bound)
    bias = jax.random.uniform(
        kb, (OUT_FEATURES,), jnp.float32, -bound, bound)

    # Input: (batch, seq, in_features) — last dim must be 5 for Linear(5, 10).
    x = jax.random.normal(kx, (10, 5, IN_FEATURES), jnp.float32)

    # Param prep is done once, outside the per-call path.
    w_t, b2d = prepare_params(weight, bias)

    out = linear_clamp(x, w_t, b2d)
    jax.block_until_ready(out)

    # Reference check in plain JAX.
    ref = jnp.clip(jnp.einsum("bsi,oi->bso", x, weight) + bias,
                   MIN_VALUE, MAX_VALUE)
    assert out.shape == (10, 5, OUT_FEATURES)
    assert jnp.allclose(out, ref, atol=1e-5, rtol=1e-5)

    print("KERNEL_OK")
</pallas_src>

<mosaic_0001>
module attributes {stable_mosaic.version = 11 : i64} {
  func.func @_linear_clamp_kernel(%arg0: i32, %arg1: memref<32x5xf32, #tpu.memory_space<vmem>>, %arg2: memref<5x10xf32, #tpu.memory_space<vmem>>, %arg3: memref<1x10xf32, #tpu.memory_space<vmem>>, %arg4: memref<32x10xf32, #tpu.memory_space<vmem>>) attributes {dimension_semantics = [#tpu.dimension_semantics<parallel>], iteration_bounds = array<i64: 2>, scalar_prefetch = 0 : i64, scratch_operands = 0 : i64, tpu.core_type = #tpu.core_type<tc>, window_params = [{transform_indices = @transform_0, window_bounds = array<i64: 32, 5>}, {pipeline_mode = #tpu.pipeline_mode<synchronous>, transform_indices = @transform_1, window_bounds = array<i64: 5, 10>}, {pipeline_mode = #tpu.pipeline_mode<synchronous>, transform_indices = @transform_2, window_bounds = array<i64: 1, 10>}, {transform_indices = @transform_3, window_bounds = array<i64: 32, 10>}]} {
    %c0 = arith.constant 0 : index
    %c0_0 = arith.constant 0 : index
    %0 = vector.load %arg1[%c0, %c0_0] : memref<32x5xf32, #tpu.memory_space<vmem>>, vector<32x5xf32>
    %c0_1 = arith.constant 0 : index
    %c0_2 = arith.constant 0 : index
    %1 = vector.load %arg2[%c0_1, %c0_2] : memref<5x10xf32, #tpu.memory_space<vmem>>, vector<5x10xf32>
    %cst = arith.constant dense<0.000000e+00> : vector<32x10xf32>
    %2 = tpu.matmul %0, %1, %cst {dimension_numbers = #tpu.dot_dimension_numbers<[1], [0], [0], [1], [0, 0, 1, 1], [], []>} : vector<32x5xf32>, vector<5x10xf32>, vector<32x10xf32> -> vector<32x10xf32>
    %c0_3 = arith.constant 0 : index
    %c0_4 = arith.constant 0 : index
    %3 = vector.load %arg3[%c0_3, %c0_4] : memref<1x10xf32, #tpu.memory_space<vmem>>, vector<1x10xf32>
    %4 = vector.broadcast %3 : vector<1x10xf32> to vector<32x10xf32>
    %5 = arith.addf %2, %4 : vector<32x10xf32>
    %cst_5 = arith.constant 0.000000e+00 : f32
    %cst_6 = arith.constant 1.000000e+00 : f32
    %6 = vector.broadcast %cst_5 : f32 to vector<32x10xf32>
    %7 = arith.maximumf %6, %5 : vector<32x10xf32>
    %8 = vector.broadcast %cst_6 : f32 to vector<32x10xf32>
    %9 = arith.minimumf %8, %7 : vector<32x10xf32>
    %c0_7 = arith.constant 0 : index
    %c0_8 = arith.constant 0 : index
    %10 = vector.load %arg4[%c0_7, %c0_8] : memref<32x10xf32, #tpu.memory_space<vmem>>, vector<32x10xf32>
    tpu.vector_store %arg4[%c0_7, %c0_8], %9 {strides = array<i32>} : memref<32x10xf32, #tpu.memory_space<vmem>>, vector<32x10xf32>,
    return
  }
  func.func @transform_0(%arg0: i32) -> (i32, i32) {
    %c0_i32 = arith.constant 0 : i32
    %c0_i32_0 = arith.constant 0 : i32
    return %arg0, %c0_i32 : i32, i32
  }
  func.func @transform_1(%arg0: i32) -> (i32, i32) {
    %c0_i32 = arith.constant 0 : i32
    %c0_i32_0 = arith.constant 0 : i32
    %c0_i32_1 = arith.constant 0 : i32
    return %c0_i32, %c0_i32_0 : i32, i32
  }
  func.func @transform_2(%arg0: i32) -> (i32, i32) {
    %c0_i32 = arith.constant 0 : i32
    %c0_i32_0 = arith.constant 0 : i32
    %c0_i32_1 = arith.constant 0 : i32
    return %c0_i32, %c0_i32_0 : i32, i32
  }
  func.func @transform_3(%arg0: i32) -> (i32, i32) {
    %c0_i32 = arith.constant 0 : i32
    %c0_i32_0 = arith.constant 0 : i32
    return %arg0, %c0_i32 : i32, i32
  }
}

</mosaic_0001>

<bundles_post_ra>
// kernel: linear_clamp.1
= control target key start
LH: loop header
LB: loop body
LE: loop exit
PB: predicated region body
PF: predicated region fallthrough
CT: control target
= control target key end

     0   :  { %s354_s12 = smov 0   ;;  %s377_s0 = inlined_call_operand.vmem [shape: f32[64,5], index: 0, kind: input, shape index: {}]   ;;  %s378_s1 = inlined_call_operand.vmem [shape: f32[5,10], index: 1, kind: input, shape index: {}]   ;;  %s379_s2 = inlined_call_operand.vmem [shape: f32[1,10], index: 2, kind: input, shape index: {}]   ;;  %s380_s3 = inlined_call_operand.vmem [shape: f32[64,10], index: 3, kind: output, shape index: {}]  }
   0x1 LB: > { %s298_s13 = sadd.s32 4294967295, %s332_s12   ;;  %p302_p0 = scmp.ge.s32.totalorder %s332_s12, 1  ;;  %s332_s12 = sphi %s354_s12, %s13_s12  }
   0x2   : > { %p138_p1 = scmp.lt.s32.totalorder %s332_s12, 3 }
   0x4   : > { %p139_p2 = pnand %p302_p0, %p138_p1 }
   0x5   : > { %s303_s16 = sshll.u32 (!%p139_p2), %s298_s13, 2 }
   0x6   : > { %142 = sbr.rel (%p139_p2) target bundleno = 155 (0x9b), region = 32  ;;  %p163_p3 = scmp.lt.s32.totalorder (!%p139_p2), %s303_s16, 7 }
   0xb   : > { %v178_v0 = vld [vmem:[%s378_s1] sm:$0x1f]  ;;  %vm196_vm0 = vcmask 1044480   ;;  %s382_s16 = smov (!%p163_p3, %s303_s16), 7  ;;  %vm183_vm1 = vcmask 39936   ;;  %vm237_vm2 = vcmask 80896  }
   0xc   : > { %315 = vmatpush.msk.msra.mxu2 %vm196_vm0, %v178_v0  ;;  %316 = vmatpush.msk.msra.mxu3 %vm196_vm0, %v178_v0  ;;  %s304_s17 = sshll.u32 %s382_s16, 3  ;;  %v325_v5 = vld [vmem:[%s379_s2] ss:$0 sm:$0xff] }
   0xd   : > { %307 = vmatpush.msk.msra.mxu0 %vm196_vm0, %v178_v0  ;;  %314 = vmatpush.msk.msra.mxu1 %vm196_vm0, %v178_v0  ;;  %s166_s20 = scalar_lea.vmem %s377_s0, %s304_s17  ;;  %s172_s25 = scalar_lea.vmem %s380_s3, %s304_s17 }
   0xe   : > { %v176_v1 = vld [vmem:[%s166_s20 + $0x10] sm:$0xff]  ;;  %v177_v2 = vld [vmem:[%s166_s20 + $0x18] sm:$0xff]  ;;  %v174_v3 = vld [vmem:[%s166_s20] sm:$0xff] }
   0xf   : > { %310 = vmatmul.msk.f32.vlgmr.msra.gmra.mxu2 %vm183_vm1, %v176_v1  ;;  %311 = vmatmul.msk.f32.vlgmr.msra.gmra.mxu3 %vm183_vm1, %v177_v2  ;;  %v175_v4 = vld [vmem:[%s166_s20 + $0x8] sm:$0xff] }
  0x10   : > { %308 = vmatmul.msk.f32.vlgmr.msra.gmra.mxu0 %vm183_vm1, %v174_v3  ;;  %309 = vmatmul.msk.f32.vlgmr.msra.gmra.mxu1 %vm183_vm1, %v175_v4 }
  0x8d   : > { %v217_v6 = vpop.f32.mrf.mxu0  ;;  %v220_v7 = vpop.f32.mrf.mxu1 }
  0x8e   : > { %v218_v8 = vadd.f32 %v325_v5, %v217_v6  ;;  %v221_v9 = vadd.f32 %v325_v5, %v220_v7 }
  0x90   : > { %v229_v10 = vmax.f32 %v218_v8, 0.0  ;;  %v230_v11 = vmax.f32 %v221_v9, 0.0 }
  0x92   : > { %v233_v12 = vmin.f32 %v229_v10, 1.0  ;;  %v234_v13 = vmin.f32 %v230_v11, 1.0  ;;  %v223_v14 = vpop.f32.mrf.mxu2  ;;  %v226_v15 = vpop.f32.mrf.mxu3 }
  0x93   : > { %v224_v16 = vadd.f32 %v325_v5, %v223_v14  ;;  %v227_v17 = vadd.f32 %v325_v5, %v226_v15 }
  0x94   : > { %238 = vst.msk [vmem:[%s172_s25] sm:$0xff] %vm237_vm2, %v233_v12 }
  0x95   : > { %239 = vst.msk [vmem:[%s172_s25 + $0x8] sm:$0xff] %vm237_vm2, %v234_v13  ;;  %v231_v18 = vmax.f32 %v224_v16, 0.0  ;;  %v232_v19 = vmax.f32 %v227_v17, 0.0 }
  0x97   : > { %v235_v20 = vmin.f32 %v231_v18, 1.0  ;;  %v236_v21 = vmin.f32 %v232_v19, 1.0 }
  0x99   : > { %240 = vst.msk [vmem:[%s172_s25 + $0x10] sm:$0xff] %vm237_vm2, %v235_v20 }
  0x9a   : > { %241 = vst.msk [vmem:[%s172_s25 + $0x18] sm:$0xff] %vm237_vm2, %v236_v21 }
  0x9b PF: > { %s13_s12 = sadd.s32 1, %s332_s12  }
  0x9c   : > { %p10_p4 = scmp.ge.s32.totalorder %s13_s12, 4  }
  0x9e   :  { %12 = sbr.rel (!%p10_p4) target bundleno = 1 (0x1), region = 62 }

</bundles_post_ra>
